<compile_context>
chip_gen: v6e
topology: v6e:2x2x1
jax: 0.10.0
libtpu: 0.0.40
codegen_flags: <defaults>
</compile_context>

<pallas_src>
import math

import jax
import jax.numpy as jnp
from jax.experimental import pallas as pl
from jax.experimental.pallas import tpu as pltpu

EPS = 1e-5


def _conv_block_kernel(x_ref, w1_ref, w2_ref, g1_ref, b1_ref, g2_ref, b2_ref,
                       o_ref, xp_scr, y1_scr):
    # x_ref  : (N, L, Cin)      f32  channels-last input (unpadded)
    # w1_ref : (3*Cin, Cout)    f32  K-stacked conv1 weights
    # w2_ref : (3*Cout, Cout)   bf16 K-stacked conv2 weights
    # g*/b*  : (1, Cout)        f32  BN affine params
    # o_ref  : (N, L//2, Cout)  f32  pooled output (channels-last)
    # xp_scr : (N, L+2, Cin)    f32  zero-halo padded input scratch
    # y1_scr : (N, L+2, Cout)   f32  zero-halo padded stage-1 output scratch
    N, L, Cin = x_ref.shape
    Cout = o_ref.shape[-1]
    R = N * L
    inv_cnt = 1.0 / float(R)      # BN stats average over the N*L real samples

    # ---- in-kernel 'same' padding: one zero halo row on each side of L ----
    xp_scr[:, 1:L + 1, :] = x_ref[...]
    xp_scr[:, 0:1, :] = jnp.zeros((N, 1, Cin), jnp.float32)
    xp_scr[:, L + 1:L + 2, :] = jnp.zeros((N, 1, Cin), jnp.float32)

    def conv3(src_ref, w_ref, cin, operand_dtype):
        # conv1d(k=3, s=1, same-pad) as ONE MXU matmul: lane-concat the three
        # shifted tap slices -> (N, L, 3*cin), collapse leading dims (proven
        # reshape class), cast right before the dot, f32 accumulate.
        taps = [src_ref[:, k:k + L, :] for k in range(3)]
        xcat = jnp.concatenate(taps, axis=-1).reshape(R, 3 * cin)
        return jnp.dot(xcat.astype(operand_dtype), w_ref[...],
                       preferred_element_type=jnp.float32)

    def bn_relu(acc, g_ref, b_ref):
        # one-pass training-mode BN (biased variance, clamped) with the
        # gamma/rsqrt/beta folded into a single scale/shift, then ReLU.
        s = jnp.sum(acc, axis=0, keepdims=True)
        ss = jnp.sum(acc * acc, axis=0, keepdims=True)
        mean = s * inv_cnt
        var = jnp.maximum(ss * inv_cnt - mean * mean, 0.0)
        scale = g_ref[...] * jax.lax.rsqrt(var + EPS)
        shift = b_ref[...] - mean * scale
        return jnp.maximum(acc * scale + shift, 0.0)

    # ---- stage 1: conv1 (f32 operands) + bn1 + relu ----
    y1 = bn_relu(conv3(xp_scr, w1_ref, Cin, jnp.float32), g1_ref, b1_ref)
    y1_scr[:, 1:L + 1, :] = y1.reshape(N, L, Cout)
    y1_scr[:, 0:1, :] = jnp.zeros((N, 1, Cout), jnp.float32)      # conv2 pad
    y1_scr[:, L + 1:L + 2, :] = jnp.zeros((N, 1, Cout), jnp.float32)

    # ---- stage 2: conv2 (bf16 operands) + bn2 + relu ----
    y2 = bn_relu(conv3(y1_scr, w2_ref, Cout, jnp.bfloat16), g2_ref, b2_ref)

    # ---- max_pool1d(kernel=2, stride=2) in registers: rows (2p, 2p+1) pair
    # up within a sample (L even), so split the row dim and take the max ----
    y2p = y2.reshape(R // 2, 2, Cout)
    pooled = jnp.maximum(y2p[:, 0, :], y2p[:, 1, :])
    o_ref[...] = pooled.reshape(N, L // 2, Cout)


def conv_block_forward(x_ncl, w1, w2, g1, b1, g2, b2):
    """Forward pass of ConvBlock. x_ncl: (N, Cin, L) -> (N, Cout, L//2)."""
    N, Cin, L = x_ncl.shape
    Cout = w1.shape[0]
    assert L % 2 == 0

    # wrapper glue: NCL -> NLC, K-stacked weight layout (k*Cin + ci, Cout)
    x = jnp.transpose(x_ncl, (0, 2, 1)).astype(jnp.float32)              # (N, L, Cin)
    w1_f = jnp.transpose(w1, (2, 1, 0)).reshape(3 * Cin, Cout).astype(jnp.float32)
    w2_f = jnp.transpose(w2, (2, 1, 0)).reshape(3 * Cout, Cout).astype(jnp.bfloat16)
    g1r = g1.reshape(1, Cout).astype(jnp.float32)
    b1r = b1.reshape(1, Cout).astype(jnp.float32)
    g2r = g2.reshape(1, Cout).astype(jnp.float32)
    b2r = b2.reshape(1, Cout).astype(jnp.float32)

    out_nlc = pl.pallas_call(
        _conv_block_kernel,
        out_shape=jax.ShapeDtypeStruct((N, L // 2, Cout), jnp.float32),
        grid=(1,),
        in_specs=[
            pl.BlockSpec((N, L, Cin), lambda i: (0, 0, 0)),
            pl.BlockSpec((3 * Cin, Cout), lambda i: (0, 0)),
            pl.BlockSpec((3 * Cout, Cout), lambda i: (0, 0)),
            pl.BlockSpec((1, Cout), lambda i: (0, 0)),
            pl.BlockSpec((1, Cout), lambda i: (0, 0)),
            pl.BlockSpec((1, Cout), lambda i: (0, 0)),
            pl.BlockSpec((1, Cout), lambda i: (0, 0)),
        ],
        out_specs=pl.BlockSpec((N, L // 2, Cout), lambda i: (0, 0, 0)),
        scratch_shapes=[
            pltpu.VMEM((N, L + 2, Cin), jnp.float32),    # zero-halo padded x
            pltpu.VMEM((N, L + 2, Cout), jnp.float32),   # zero-halo stage-1 out
        ],
        compiler_params=pltpu.CompilerParams(
            dimension_semantics=("arbitrary",),
            # fits the 64 MiB v7x VMEM guidance with headroom; raise toward
            # ~96 MiB on v5e/v6e once the fused block grows to real sizes.
            vmem_limit_bytes=32 * 1024 * 1024,
        ),
    )(x, w1_f, w2_f, g1r, b1r, g2r, b2r)

    # cheap output transpose kept in the wrapper at this toy shape (see notes)
    return jnp.transpose(out_nlc, (0, 2, 1))                             # (N, Cout, L//2)


def _init_conv_weight(key, n_out, n_in, width):
    # Matches init_layer(): uniform(-scale, scale), scale = sqrt(3)*sqrt(2/(n_in*width))
    n = n_in * width
    std = math.sqrt(2.0 / n)
    scale = std * math.sqrt(3.0)
    return jax.random.uniform(key, (n_out, n_in, width), jnp.float32, -scale, scale)


def _reference_forward(x, w1, w2, g1, b1, g2, b2):
    # Pure-JAX f32 reference (same training-mode BN semantics).
    def conv1d(x, w):
        return jax.lax.conv_general_dilated(
            x, w, window_strides=(1,), padding=((1, 1),),
            dimension_numbers=("NCH", "OIH", "NCH"))

    def bn(x, g, b):
        mean = jnp.mean(x, axis=(0, 2), keepdims=True)
        var = jnp.mean(jnp.square(x - mean), axis=(0, 2), keepdims=True)
        xn = (x - mean) * jax.lax.rsqrt(var + EPS)
        return xn * g.reshape(1, -1, 1) + b.reshape(1, -1, 1)

    h = jax.nn.relu(bn(conv1d(x, w1), g1, b1))
    h = jax.nn.relu(bn(conv1d(h, w2), g2, b2))
    N, C, L = h.shape
    return jnp.max(h.reshape(N, C, L // 2, 2), axis=-1)


if __name__ == "__main__":
    N, Cin, Cout, L = 2, 4, 8, 16
    key = jax.random.PRNGKey(0)
    k_x, k_w1, k_w2 = jax.random.split(key, 3)

    x = jax.random.normal(k_x, (N, Cin, L), dtype=jnp.float32)     # PyTorch NCL input
    w1 = _init_conv_weight(k_w1, Cout, Cin, 3)                     # conv1.weight
    w2 = _init_conv_weight(k_w2, Cout, Cout, 3)                    # conv2.weight
    g1 = jnp.ones((Cout,), jnp.float32)                            # bn1 gamma (init_bn)
    b1 = jnp.zeros((Cout,), jnp.float32)                           # bn1 beta
    g2 = jnp.ones((Cout,), jnp.float32)
    b2 = jnp.zeros((Cout,), jnp.float32)

    fwd = jax.jit(conv_block_forward)
    out = jax.block_until_ready(fwd(x, w1, w2, g1, b1, g2, b2))

    ref = _reference_forward(x, w1, w2, g1, b1, g2, b2)
    assert out.shape == (N, Cout, L // 2), out.shape
    # tolerance covers bf16 MXU operands in conv2 + one-pass variance
    assert jnp.allclose(out, ref, atol=2e-2, rtol=2e-2), float(jnp.abs(out - ref).max())

    print("KERNEL_OK")
</pallas_src>

<mosaic_0001>
module attributes {stable_mosaic.version = 11 : i64} {
  func.func @_conv_block_kernel(%arg0: i32, %arg1: memref<2x16x4xf32, #tpu.memory_space<vmem>>, %arg2: memref<12x8xf32, #tpu.memory_space<vmem>>, %arg3: memref<24x8xbf16, #tpu.memory_space<vmem>>, %arg4: memref<1x8xf32, #tpu.memory_space<vmem>>, %arg5: memref<1x8xf32, #tpu.memory_space<vmem>>, %arg6: memref<1x8xf32, #tpu.memory_space<vmem>>, %arg7: memref<1x8xf32, #tpu.memory_space<vmem>>, %arg8: memref<2x8x8xf32, #tpu.memory_space<vmem>>, %arg9: memref<2x18x4xf32, #tpu.memory_space<vmem>>, %arg10: memref<2x18x8xf32, #tpu.memory_space<vmem>>) attributes {dimension_semantics = [#tpu.dimension_semantics<arbitrary>], iteration_bounds = array<i64: 1>, scalar_prefetch = 0 : i64, scratch_operands = 2 : i64, tpu.core_type = #tpu.core_type<tc>, window_params = [{pipeline_mode = #tpu.pipeline_mode<synchronous>, transform_indices = @transform_0, window_bounds = array<i64: 2, 16, 4>}, {pipeline_mode = #tpu.pipeline_mode<synchronous>, transform_indices = @transform_1, window_bounds = array<i64: 12, 8>}, {pipeline_mode = #tpu.pipeline_mode<synchronous>, transform_indices = @transform_2, window_bounds = array<i64: 24, 8>}, {pipeline_mode = #tpu.pipeline_mode<synchronous>, transform_indices = @transform_3, window_bounds = array<i64: 1, 8>}, {pipeline_mode = #tpu.pipeline_mode<synchronous>, transform_indices = @transform_4, window_bounds = array<i64: 1, 8>}, {pipeline_mode = #tpu.pipeline_mode<synchronous>, transform_indices = @transform_5, window_bounds = array<i64: 1, 8>}, {pipeline_mode = #tpu.pipeline_mode<synchronous>, transform_indices = @transform_6, window_bounds = array<i64: 1, 8>}, {pipeline_mode = #tpu.pipeline_mode<synchronous>, transform_indices = @transform_7, window_bounds = array<i64: 2, 8, 8>}]} {
    %c0 = arith.constant 0 : index
    %c0_0 = arith.constant 0 : index
    %c0_1 = arith.constant 0 : index
    %0 = vector.load %arg1[%c0, %c0_0, %c0_1] : memref<2x16x4xf32, #tpu.memory_space<vmem>>, vector<2x16x4xf32>
    %c0_2 = arith.constant 0 : index
    %c1 = arith.constant 1 : index
    %c0_3 = arith.constant 0 : index
    %1 = vector.load %arg9[%c0_2, %c1, %c0_3] : memref<2x18x4xf32, #tpu.memory_space<vmem>>, vector<2x16x4xf32>
    tpu.vector_store %arg9[%c0_2, %c1, %c0_3], %0 {strides = array<i32>} : memref<2x18x4xf32, #tpu.memory_space<vmem>>, vector<2x16x4xf32>,
    %cst = arith.constant 0.000000e+00 : f32
    %2 = vector.broadcast %cst : f32 to vector<2x1x4xf32>
    %c0_4 = arith.constant 0 : index
    %c0_5 = arith.constant 0 : index
    %c0_6 = arith.constant 0 : index
    %3 = vector.load %arg9[%c0_4, %c0_5, %c0_6] : memref<2x18x4xf32, #tpu.memory_space<vmem>>, vector<2x1x4xf32>
    tpu.vector_store %arg9[%c0_4, %c0_5, %c0_6], %2 {strides = array<i32>} : memref<2x18x4xf32, #tpu.memory_space<vmem>>, vector<2x1x4xf32>,
    %cst_7 = arith.constant 0.000000e+00 : f32
    %4 = vector.broadcast %cst_7 : f32 to vector<2x1x4xf32>
    %c0_8 = arith.constant 0 : index
    %c17 = arith.constant 17 : index
    %c0_9 = arith.constant 0 : index
    %5 = vector.load %arg9[%c0_8, %c17, %c0_9] : memref<2x18x4xf32, #tpu.memory_space<vmem>>, vector<2x1x4xf32>
    tpu.vector_store %arg9[%c0_8, %c17, %c0_9], %4 {strides = array<i32>} : memref<2x18x4xf32, #tpu.memory_space<vmem>>, vector<2x1x4xf32>,
    %c0_10 = arith.constant 0 : index
    %c0_11 = arith.constant 0 : index
    %c0_12 = arith.constant 0 : index
    %6 = vector.load %arg9[%c0_10, %c0_11, %c0_12] : memref<2x18x4xf32, #tpu.memory_space<vmem>>, vector<2x16x4xf32>
    %c0_13 = arith.constant 0 : index
    %c1_14 = arith.constant 1 : index
    %c0_15 = arith.constant 0 : index
    %7 = vector.load %arg9[%c0_13, %c1_14, %c0_15] : memref<2x18x4xf32, #tpu.memory_space<vmem>>, vector<2x16x4xf32>
    %c0_16 = arith.constant 0 : index
    %c2 = arith.constant 2 : index
    %c0_17 = arith.constant 0 : index
    %8 = vector.load %arg9[%c0_16, %c2, %c0_17] : memref<2x18x4xf32, #tpu.memory_space<vmem>>, vector<2x16x4xf32>
    %9 = tpu.concatenate %6, %7, %8 in 2 : vector<2x16x4xf32>, vector<2x16x4xf32>, vector<2x16x4xf32> -> vector<2x16x12xf32>
    %10 = vector.shape_cast %9 : vector<2x16x12xf32> to vector<32x12xf32>
    %c0_18 = arith.constant 0 : index
    %c0_19 = arith.constant 0 : index
    %11 = vector.load %arg2[%c0_18, %c0_19] : memref<12x8xf32, #tpu.memory_space<vmem>>, vector<12x8xf32>
    %cst_20 = arith.constant dense<0.000000e+00> : vector<32x8xf32>
    %12 = tpu.matmul %10, %11, %cst_20 {dimension_numbers = #tpu.dot_dimension_numbers<[1], [0], [0], [1], [0, 0, 1, 1], [], []>} : vector<32x12xf32>, vector<12x8xf32>, vector<32x8xf32> -> vector<32x8xf32>
    %cst_21 = arith.constant dense<0.000000e+00> : vector<8xf32>
    %13 = vector.multi_reduction <add>, %12, %cst_21 [0] : vector<32x8xf32> to vector<8xf32>
    %14 = vector.shape_cast %13 : vector<8xf32> to vector<1x8xf32>
    %15 = arith.mulf %12, %12 : vector<32x8xf32>
    %cst_22 = arith.constant dense<0.000000e+00> : vector<8xf32>
    %16 = vector.multi_reduction <add>, %15, %cst_22 [0] : vector<32x8xf32> to vector<8xf32>
    %17 = vector.shape_cast %16 : vector<8xf32> to vector<1x8xf32>
    %cst_23 = arith.constant 3.125000e-02 : f32
    %18 = vector.broadcast %cst_23 : f32 to vector<1x8xf32>
    %19 = arith.mulf %14, %18 : vector<1x8xf32>
    %cst_24 = arith.constant 3.125000e-02 : f32
    %20 = vector.broadcast %cst_24 : f32 to vector<1x8xf32>
    %21 = arith.mulf %17, %20 : vector<1x8xf32>
    %22 = arith.mulf %19, %19 : vector<1x8xf32>
    %23 = arith.subf %21, %22 : vector<1x8xf32>
    %cst_25 = arith.constant 0.000000e+00 : f32
    %24 = vector.broadcast %cst_25 : f32 to vector<1x8xf32>
    %25 = arith.maximumf %23, %24 : vector<1x8xf32>
    %c0_26 = arith.constant 0 : index
    %c0_27 = arith.constant 0 : index
    %26 = vector.load %arg4[%c0_26, %c0_27] : memref<1x8xf32, #tpu.memory_space<vmem>>, vector<1x8xf32>
    %cst_28 = arith.constant 9.99999974E-6 : f32
    %27 = vector.broadcast %cst_28 : f32 to vector<1x8xf32>
    %28 = arith.addf %25, %27 : vector<1x8xf32>
    %29 = math.rsqrt %28 : vector<1x8xf32>
    %30 = arith.mulf %26, %29 : vector<1x8xf32>
    %c0_29 = arith.constant 0 : index
    %c0_30 = arith.constant 0 : index
    %31 = vector.load %arg5[%c0_29, %c0_30] : memref<1x8xf32, #tpu.memory_space<vmem>>, vector<1x8xf32>
    %32 = arith.mulf %19, %30 : vector<1x8xf32>
    %33 = arith.subf %31, %32 : vector<1x8xf32>
    %34 = vector.broadcast %30 : vector<1x8xf32> to vector<32x8xf32>
    %35 = arith.mulf %12, %34 : vector<32x8xf32>
    %36 = vector.broadcast %33 : vector<1x8xf32> to vector<32x8xf32>
    %37 = arith.addf %35, %36 : vector<32x8xf32>
    %cst_31 = arith.constant 0.000000e+00 : f32
    %38 = vector.broadcast %cst_31 : f32 to vector<32x8xf32>
    %39 = arith.maximumf %37, %38 : vector<32x8xf32>
    %40 = vector.shape_cast %39 : vector<32x8xf32> to vector<2x16x8xf32>
    %c0_32 = arith.constant 0 : index
    %c1_33 = arith.constant 1 : index
    %c0_34 = arith.constant 0 : index
    %41 = vector.load %arg10[%c0_32, %c1_33, %c0_34] : memref<2x18x8xf32, #tpu.memory_space<vmem>>, vector<2x16x8xf32>
    tpu.vector_store %arg10[%c0_32, %c1_33, %c0_34], %40 {strides = array<i32>} : memref<2x18x8xf32, #tpu.memory_space<vmem>>, vector<2x16x8xf32>,
    %cst_35 = arith.constant 0.000000e+00 : f32
    %42 = vector.broadcast %cst_35 : f32 to vector<2x1x8xf32>
    %c0_36 = arith.constant 0 : index
    %c0_37 = arith.constant 0 : index
    %c0_38 = arith.constant 0 : index
    %43 = vector.load %arg10[%c0_36, %c0_37, %c0_38] : memref<2x18x8xf32, #tpu.memory_space<vmem>>, vector<2x1x8xf32>
    tpu.vector_store %arg10[%c0_36, %c0_37, %c0_38], %42 {strides = array<i32>} : memref<2x18x8xf32, #tpu.memory_space<vmem>>, vector<2x1x8xf32>,
    %cst_39 = arith.constant 0.000000e+00 : f32
    %44 = vector.broadcast %cst_39 : f32 to vector<2x1x8xf32>
    %c0_40 = arith.constant 0 : index
    %c17_41 = arith.constant 17 : index
    %c0_42 = arith.constant 0 : index
    %45 = vector.load %arg10[%c0_40, %c17_41, %c0_42] : memref<2x18x8xf32, #tpu.memory_space<vmem>>, vector<2x1x8xf32>
    tpu.vector_store %arg10[%c0_40, %c17_41, %c0_42], %44 {strides = array<i32>} : memref<2x18x8xf32, #tpu.memory_space<vmem>>, vector<2x1x8xf32>,
    %c0_43 = arith.constant 0 : index
    %c0_44 = arith.constant 0 : index
    %c0_45 = arith.constant 0 : index
    %46 = vector.load %arg10[%c0_43, %c0_44, %c0_45] : memref<2x18x8xf32, #tpu.memory_space<vmem>>, vector<2x16x8xf32>
    %c0_46 = arith.constant 0 : index
    %c1_47 = arith.constant 1 : index
    %c0_48 = arith.constant 0 : index
    %47 = vector.load %arg10[%c0_46, %c1_47, %c0_48] : memref<2x18x8xf32, #tpu.memory_space<vmem>>, vector<2x16x8xf32>
    %c0_49 = arith.constant 0 : index
    %c2_50 = arith.constant 2 : index
    %c0_51 = arith.constant 0 : index
    %48 = vector.load %arg10[%c0_49, %c2_50, %c0_51] : memref<2x18x8xf32, #tpu.memory_space<vmem>>, vector<2x16x8xf32>
    %49 = tpu.concatenate %46, %47, %48 in 2 : vector<2x16x8xf32>, vector<2x16x8xf32>, vector<2x16x8xf32> -> vector<2x16x24xf32>
    %50 = vector.shape_cast %49 : vector<2x16x24xf32> to vector<32x24xf32>
    %51 = arith.truncf %50 : vector<32x24xf32> to vector<32x24xbf16>
    %c0_52 = arith.constant 0 : index
    %c0_53 = arith.constant 0 : index
    %52 = vector.load %arg3[%c0_52, %c0_53] : memref<24x8xbf16, #tpu.memory_space<vmem>>, vector<24x8xbf16>
    %cst_54 = arith.constant dense<0.000000e+00> : vector<32x8xf32>
    %53 = tpu.matmul %51, %52, %cst_54 {dimension_numbers = #tpu.dot_dimension_numbers<[1], [0], [0], [1], [0, 0, 1, 1], [], []>} : vector<32x24xbf16>, vector<24x8xbf16>, vector<32x8xf32> -> vector<32x8xf32>
    %cst_55 = arith.constant dense<0.000000e+00> : vector<8xf32>
    %54 = vector.multi_reduction <add>, %53, %cst_55 [0] : vector<32x8xf32> to vector<8xf32>
    %55 = vector.shape_cast %54 : vector<8xf32> to vector<1x8xf32>
    %56 = arith.mulf %53, %53 : vector<32x8xf32>
    %cst_56 = arith.constant dense<0.000000e+00> : vector<8xf32>
    %57 = vector.multi_reduction <add>, %56, %cst_56 [0] : vector<32x8xf32> to vector<8xf32>
    %58 = vector.shape_cast %57 : vector<8xf32> to vector<1x8xf32>
    %cst_57 = arith.constant 3.125000e-02 : f32
    %59 = vector.broadcast %cst_57 : f32 to vector<1x8xf32>
    %60 = arith.mulf %55, %59 : vector<1x8xf32>
    %cst_58 = arith.constant 3.125000e-02 : f32
    %61 = vector.broadcast %cst_58 : f32 to vector<1x8xf32>
    %62 = arith.mulf %58, %61 : vector<1x8xf32>
    %63 = arith.mulf %60, %60 : vector<1x8xf32>
    %64 = arith.subf %62, %63 : vector<1x8xf32>
    %cst_59 = arith.constant 0.000000e+00 : f32
    %65 = vector.broadcast %cst_59 : f32 to vector<1x8xf32>
    %66 = arith.maximumf %64, %65 : vector<1x8xf32>
    %c0_60 = arith.constant 0 : index
    %c0_61 = arith.constant 0 : index
    %67 = vector.load %arg6[%c0_60, %c0_61] : memref<1x8xf32, #tpu.memory_space<vmem>>, vector<1x8xf32>
    %cst_62 = arith.constant 9.99999974E-6 : f32
    %68 = vector.broadcast %cst_62 : f32 to vector<1x8xf32>
    %69 = arith.addf %66, %68 : vector<1x8xf32>
    %70 = math.rsqrt %69 : vector<1x8xf32>
    %71 = arith.mulf %67, %70 : vector<1x8xf32>
    %c0_63 = arith.constant 0 : index
    %c0_64 = arith.constant 0 : index
    %72 = vector.load %arg7[%c0_63, %c0_64] : memref<1x8xf32, #tpu.memory_space<vmem>>, vector<1x8xf32>
    %73 = arith.mulf %60, %71 : vector<1x8xf32>
    %74 = arith.subf %72, %73 : vector<1x8xf32>
    %75 = vector.broadcast %71 : vector<1x8xf32> to vector<32x8xf32>
    %76 = arith.mulf %53, %75 : vector<32x8xf32>
    %77 = vector.broadcast %74 : vector<1x8xf32> to vector<32x8xf32>
    %78 = arith.addf %76, %77 : vector<32x8xf32>
    %cst_65 = arith.constant 0.000000e+00 : f32
    %79 = vector.broadcast %cst_65 : f32 to vector<32x8xf32>
    %80 = arith.maximumf %78, %79 : vector<32x8xf32>
    %81 = vector.shape_cast %80 : vector<32x8xf32> to vector<16x2x8xf32>
    %82 = vector.extract_strided_slice %81 {offsets = [0, 0, 0], sizes = [16, 1, 8], strides = [1, 1, 1]} : vector<16x2x8xf32> to vector<16x1x8xf32>
    %83 = vector.shape_cast %82 : vector<16x1x8xf32> to vector<16x8xf32>
    %84 = vector.extract_strided_slice %81 {offsets = [0, 1, 0], sizes = [16, 1, 8], strides = [1, 1, 1]} : vector<16x2x8xf32> to vector<16x1x8xf32>
    %85 = vector.shape_cast %84 : vector<16x1x8xf32> to vector<16x8xf32>
    %86 = arith.maximumf %83, %85 : vector<16x8xf32>
    %87 = vector.shape_cast %86 : vector<16x8xf32> to vector<2x8x8xf32>
    %c0_66 = arith.constant 0 : index
    %c0_67 = arith.constant 0 : index
    %c0_68 = arith.constant 0 : index
    %88 = vector.load %arg8[%c0_66, %c0_67, %c0_68] : memref<2x8x8xf32, #tpu.memory_space<vmem>>, vector<2x8x8xf32>
    tpu.vector_store %arg8[%c0_66, %c0_67, %c0_68], %87 {strides = array<i32>} : memref<2x8x8xf32, #tpu.memory_space<vmem>>, vector<2x8x8xf32>,
    return
  }
  func.func @transform_0(%arg0: i32) -> (i32, i32, i32) {
    %c0_i32 = arith.constant 0 : i32
    %c0_i32_0 = arith.constant 0 : i32
    %c0_i32_1 = arith.constant 0 : i32
    %c0_i32_2 = arith.constant 0 : i32
    return %c0_i32, %c0_i32_0, %c0_i32_1 : i32, i32, i32
  }
  func.func @transform_1(%arg0: i32) -> (i32, i32) {
    %c0_i32 = arith.constant 0 : i32
    %c0_i32_0 = arith.constant 0 : i32
    %c0_i32_1 = arith.constant 0 : i32
    return %c0_i32, %c0_i32_0 : i32, i32
  }
  func.func @transform_2(%arg0: i32) -> (i32, i32) {
    %c0_i32 = arith.constant 0 : i32
    %c0_i32_0 = arith.constant 0 : i32
    %c0_i32_1 = arith.constant 0 : i32
    return %c0_i32, %c0_i32_0 : i32, i32
  }
  func.func @transform_3(%arg0: i32) -> (i32, i32) {
    %c0_i32 = arith.constant 0 : i32
    %c0_i32_0 = arith.constant 0 : i32
    %c0_i32_1 = arith.constant 0 : i32
    return %c0_i32, %c0_i32_0 : i32, i32
  }
  func.func @transform_4(%arg0: i32) -> (i32, i32) {
    %c0_i32 = arith.constant 0 : i32
    %c0_i32_0 = arith.constant 0 : i32
    %c0_i32_1 = arith.constant 0 : i32
    return %c0_i32, %c0_i32_0 : i32, i32
  }
  func.func @transform_5(%arg0: i32) -> (i32, i32) {
    %c0_i32 = arith.constant 0 : i32
    %c0_i32_0 = arith.constant 0 : i32
    %c0_i32_1 = arith.constant 0 : i32
    return %c0_i32, %c0_i32_0 : i32, i32
  }
  func.func @transform_6(%arg0: i32) -> (i32, i32) {
    %c0_i32 = arith.constant 0 : i32
    %c0_i32_0 = arith.constant 0 : i32
    %c0_i32_1 = arith.constant 0 : i32
    return %c0_i32, %c0_i32_0 : i32, i32
  }
  func.func @transform_7(%arg0: i32) -> (i32, i32, i32) {
    %c0_i32 = arith.constant 0 : i32
    %c0_i32_0 = arith.constant 0 : i32
    %c0_i32_1 = arith.constant 0 : i32
    %c0_i32_2 = arith.constant 0 : i32
    return %c0_i32, %c0_i32_0, %c0_i32_1 : i32, i32, i32
  }
}

</mosaic_0001>

<bundles_post_ra>
// kernel: conv_block_forward.1
= control target key start
LH: loop header
LB: loop body
LE: loop exit
PB: predicated region body
PF: predicated region fallthrough
CT: control target
= control target key end

     0   :  { %vm31_vm0 = vcmask 31744   ;;  %vm36_vm1 = vcmask 24576   ;;  %vm109_vm2 = vcmask 1043456   ;;  %v811_v2 = vmov 0.0   ;;  %s812_s13 = smov 8   ;;  %s814_s19 = smov 16   ;;  %s1002_s0 = inlined_call_operand.vmem [shape: f32[2,16,4], index: 0, kind: input, shape index: {}]   ;;  %s1003_s1 = inlined_call_operand.vmem [shape: f32[12,8], index: 1, kind: input, shape index: {}]   ;;  %s1004_s3 = inlined_call_operand.vmem [shape: f32[1,8], index: 3, kind: input, shape index: {}]   ;;  %s1005_s4 = inlined_call_operand.vmem [shape: f32[1,8], index: 4, kind: input, shape index: {}]   ;;  %s1006_s2 = inlined_call_operand.vmem [shape: bf16[24,8], index: 2, kind: input, shape index: {}]   ;;  %s1007_s5 = inlined_call_operand.vmem [shape: f32[1,8], index: 5, kind: input, shape index: {}]   ;;  %s1008_s6 = inlined_call_operand.vmem [shape: f32[1,8], index: 6, kind: input, shape index: {}]   ;;  %s1009_s7 = inlined_call_operand.vmem [shape: f32[2,8,8], index: 7, kind: output, shape index: {}]  }
   0x1   :  { %v27_v0 = vld [vmem:[%s1002_s0] sm:$0xff]  ;;  %v28_v1 = vld [vmem:[%s1002_s0 + $0x8] sm:$0xff]  ;;  %39 = vst.msk [vmem:[#allocation2 + $0x11] sm:$0x1] %vm36_vm1, %v811_v2  ;;  %37 = vst.msk [vmem:[#allocation2] sm:$0x1] %vm36_vm1, %v811_v2 }
   0x2   :  { %38 = vst.msk [vmem:[#allocation2 + $0x18] sm:$0x1] %vm36_vm1, %v811_v2  ;;  %40 = vst.msk [vmem:[#allocation2 + $0x29] sm:$0x1] %vm36_vm1, %v811_v2  ;;  %v30_v3 = vld [vmem:[%s1002_s0 + $0x18] sm:$0xff]  ;;  %v29_v4 = vld [vmem:[%s1002_s0 + $0x10] sm:$0xff] }
   0x3   :  { %32 = vst.msk [vmem:[#allocation2 + $0x1] sm:$0xff] %vm31_vm0, %v27_v0  ;;  %33 = vst.msk [vmem:[#allocation2 + $0x9] sm:$0xff] %vm31_vm0, %v28_v1  ;;  %v95_v5 = vld [vmem:[%s1003_s1 + $0x8] sm:$0xf]  ;;  %v94_v6 = vld [vmem:[%s1003_s1] sm:$0xff]  ;;  %s813_s0 = smov 4  }
   0x4   :  { %35 = vst.msk [vmem:[#allocation2 + $0x21] sm:$0xff] %vm31_vm0, %v30_v3  ;;  %34 = vst.msk [vmem:[#allocation2 + $0x19] sm:$0xff] %vm31_vm0, %v29_v4  ;;  %761 = vmatprep.subr.msk.mxu0 %vm109_vm2, %v95_v5  ;;  %vm89_vm3 = vcmask 64512   ;;  %vm96_vm4 = vcmask 97280   ;;  %vm268_vm5 = vcmask 57344   ;;  %vm321_vm6 = vcmask 130048  }
   0x5   :  { %762 = vmatpush3.msk.msra.mxu0 %vm109_vm2, %v95_v5  ;;  %272 = vst.msk [vmem:[#allocation3 + $0x29] sm:$0x1] %vm268_vm5, %v811_v2  ;;  %269 = vst.msk [vmem:[#allocation3] sm:$0x1] %vm268_vm5, %v811_v2  ;;  %vm340_vm7 = vcmask 195584   ;;  %vm697_vm8 = vcmask 1041409  }
   0x6   :  { %763 = vmatprep.subr.mxu0 %v94_v6  ;;  %270 = vst.msk [vmem:[#allocation3 + $0x18] sm:$0x1] %vm268_vm5, %v811_v2  ;;  %271 = vst.msk [vmem:[#allocation3 + $0x11] sm:$0x1] %vm268_vm5, %v811_v2  ;;  %vm699_vm9 = vcmask 1042434   ;;  %vm701_vm10 = vcmask 1043459  }
   0x7   :  { %764 = vmatpush3.msra.mxu0 %v94_v6  ;;  %vm703_vm11 = vcmask 1044484   ;;  %vm705_vm12 = vcmask 1045509   ;;  %vm707_vm13 = vcmask 1046534   ;;  %vm709_vm14 = vcmask 1047559  }
   0xa   :  { %v49_v7 = vld [vmem:[#allocation2 + $0x2] sm:$0xff]  ;;  %v50_v9 = vld [vmem:[#allocation2 + $0xa] sm:$0xff] }
   0xb   :  { %v45_v8 = vld [vmem:[#allocation2 + $0x1] sm:$0xff]  ;;  %73 = vrot.lane.b32.xlu1 %v49_v7, %s812_s13  ;;  %v46_v10 = vld [vmem:[#allocation2 + $0x9] sm:$0xff]  ;;  %v47_v12 = vld [vmem:[#allocation2 + $0x19] sm:$0xff] }
   0xc   :  { %57 = vrot.lane.b32.xlu0 %v45_v8, %s813_s0  ;;  %v48_v11 = vld [vmem:[#allocation2 + $0x21] sm:$0xff]  ;;  %v43_v28 = vld [vmem:[#allocation2 + $0x18] sm:$0xff] }
   0xd   :  { %v52_v13 = vld [vmem:[#allocation2 + $0x22] sm:$0xff]  ;;  %v51_v14 = vld [vmem:[#allocation2 + $0x1a] sm:$0xff] }
   0xe   :  { %v41_v15 = vld [vmem:[#allocation2] sm:$0xff]  ;;  %v42_v20 = vld [vmem:[#allocation2 + $0x8] sm:$0xff] }
   0xf   :  { %75 = vrot.lane.b32.xlu1 %v50_v9, %s812_s13  ;;  %v44_v27 = vld [vmem:[#allocation2 + $0x20] sm:$0xff] }
  0x10   :  { %59 = vrot.lane.b32.xlu0 %v46_v10, %s813_s0 }
  0x13   :  { %63 = vrot.lane.b32.xlu1 %v48_v11, %s813_s0  ;;  %v241_v11 = vlaneseq }
  0x14   :  { %61 = vrot.lane.b32.xlu0 %v47_v12, %s813_s0 }
  0x15   :  { %v912_v12 = vshrl.u32 %v241_v11, 7 }
  0x17   :  { %79 = vrot.lane.b32.xlu1 %v52_v13, %s812_s13  ;;  %v233_v13 = vld [vmem:[%s1004_s3] sm:$0x1] }
  0x18   :  { %77 = vrot.lane.b32.xlu0 %v51_v14, %s812_s13  ;;  %v918_v14 = vsub.s32 0, %v912_v12 }
  0x7d   :  { %v74_v16 = vpop.permute.xlu1 %73 }
  0x7e   :  { %v58_v17 = vpop.permute.xlu0 %57 }
  0x7f   :  { %v85_v18 = vsel %vm31_vm0, %v41_v15, %v58_v17  ;;  %v237_v17 = vld [vmem:[%s1005_s4] sm:$0x1] }
  0x80   :  { %v90_v19 = vsel %vm89_vm3, %v85_v18, %v74_v16 }
  0x81   :  { %765 = vmatprep.mubr.msk.f32.mxu0 %vm96_vm4, %v90_v19  ;;  %v76_v21 = vpop.permute.xlu1 %75 }
  0x82   :  { %v60_v22 = vpop.permute.xlu0 %59 }
  0x83   :  { %v86_v23 = vsel %vm31_vm0, %v42_v20, %v60_v22 }
  0x84   :  { %v91_v24 = vsel %vm89_vm3, %v86_v23, %v76_v21 }
  0x85   :  { %766 = vmatmul.mubr.msk.f32.vlgmr.msra.gmra.mxu0 %vm96_vm4, %v91_v24  ;;  %v64_v25 = vpop.permute.xlu1 %63 }
  0x86   :  { %v62_v26 = vpop.permute.xlu0 %61  ;;  %v88_v29 = vsel %vm31_vm0, %v44_v27, %v64_v25 }
  0x87   :  { %v87_v30 = vsel %vm31_vm0, %v43_v28, %v62_v26 }
  0x89   :  { %v80_v31 = vpop.permute.xlu1 %79 }
  0x8a   :  { %v78_v32 = vpop.permute.xlu0 %77  ;;  %v93_v33 = vsel %vm89_vm3, %v88_v29, %v80_v31 }
  0x8b   :  { %v92_v34 = vsel %vm89_vm3, %v87_v30, %v78_v32 }
  0x8c   :  { %768 = vmatprep.mubr.msk.f32.mxu0 %vm96_vm4, %v92_v34  ;;  %v805_v34 = vld [vmem:[%s1006_s2 + $0x8] ss:$0 sps:$4 sm:$0xff]  }
  0x8d   :  { %769 = vmatmul.mubr.msk.f32.gmra.mxu0 %vm96_vm4, %v93_v33  ;;  %779 = vmatprep.subr.msk.bf16.mxu1 %vm109_vm2, %v805_v34 }
 0x145   :  { %v767_v35 = vpop.f32.mrf.mxu0 }
 0x146   :  { %v212_v38 = vmul.f32 %v767_v35, %v767_v35  ;;  %v199_v41 = vsel %vm89_vm3, %v767_v35, 0.0 }
 0x147   :  { %v179_v36 = vpop.f32.mrf.mxu0 }
 0x148   :  { %v211_v37 = vmul.f32 %v179_v36, %v179_v36  ;;  %v198_v39 = vsel %vm89_vm3, %v179_v36, 0.0  ;;  %v216_v45 = vsel %vm89_vm3, %v212_v38, 0.0 }
 0x149   :  { %v200_v43 = vadd.f32 %v199_v41, %v198_v39 }
 0x14a   :  { %v215_v42 = vsel %vm89_vm3, %v211_v37, 0.0 }
 0x14b   :  { %v217_v49 = vadd.f32 %v216_v45, %v215_v42 }
 0x14d   :  { %v770_v40 = vpop.f32.mrf.mxu0 }
 0x14e   :  { %v214_v46 = vmul.f32 %v770_v40, %v770_v40  ;;  %v203_v51 = vsel %vm89_vm3, %v770_v40, 0.0 }
 0x14f   :  { %v189_v44 = vpop.f32.mrf.mxu0 }
 0x150   :  { %v201_v47 = vsel %vm89_vm3, %v189_v44, 0.0  ;;  %v213_v48 = vmul.f32 %v189_v44, %v189_v44  ;;  %v220_v55 = vsel %vm89_vm3, %v214_v46, 0.0 }
 0x151   :  { %v202_v50 = vadd.f32 %v201_v47, %v200_v43 }
 0x152   :  { %v218_v52 = vsel %vm89_vm3, %v213_v48, 0.0 }
 0x153   :  { %v204_v53 = vadd.f32 %v203_v51, %v202_v50  ;;  %v219_v54 = vadd.f32 %v218_v52, %v217_v49 }
 0x155   :  { %v205_v56 = vrot.slane %v204_v53, 4  ;;  %v221_v57 = vadd.f32 %v220_v55, %v219_v54 }
 0x157   :  { %v206_v58 = vadd.f32 %v205_v56, %v204_v53  ;;  %v222_v59 = vrot.slane %v221_v57, 4 }
 0x159   :  { %v207_v60 = vrot.slane %v206_v58, 2  ;;  %v223_v61 = vadd.f32 %v222_v59, %v221_v57 }
 0x15b   :  { %v208_v62 = vadd.f32 %v207_v60, %v206_v58  ;;  %v224_v63 = vrot.slane %v223_v61, 2 }
 0x15d   :  { %v209_v0 = vrot.slane %v208_v62, 1  ;;  %v225_v1 = vadd.f32 %v224_v63, %v223_v61 }
 0x15f   :  { %v210_v2 = vadd.f32 %v209_v0, %v208_v62  ;;  %v226_v3 = vrot.slane %v225_v1, 1 }
 0x161   :  { %v227_v4 = vadd.f32 %v226_v3, %v225_v1  ;;  %v228_v5 = vmul.f32 0.03125, %v210_v2 }
 0x163   :  { %v229_v6 = vmul.f32 0.03125, %v227_v4  ;;  %v230_v7 = vmul.f32 %v228_v5, %v228_v5 }
 0x165   :  { %v231_v8 = vsub.f32 %v229_v6, %v230_v7 }
 0x167   :  { %v232_v9 = vmax.f32 %v231_v8, 0.0 }
 0x169   :  { %v234_v10 = vadd.f32 1e-05, %v232_v9 }
 0x16b   :  { %807 = vrsqrt.f32 %v234_v10 }
 0x178   :  { %v808_v15 = vpop.eup %807 }
 0x179   :  { %v236_v16 = vmul.f32 %v808_v15, %v233_v13 }
 0x17b   :  { %v238_v18 = vmul.f32 %v236_v16, %v228_v5  ;;  %v244_v19 = vrot.slane %v236_v16, %v918_v14 }
 0x17d   :  { %v239_v20 = vsub.f32 %v237_v17, %v238_v18  ;;  %v246_v21 = vmul.f32 %v244_v19, %v179_v36  ;;  %v247_v22 = vmul.f32 %v767_v35, %v244_v19  ;;  %v248_v23 = vmul.f32 %v244_v19, %v189_v44  ;;  %v806_v36 = vld [vmem:[%s1006_s2] sm:$0xff]  }
 0x17e   :  { %v249_v24 = vmul.f32 %v770_v40, %v244_v19  ;;  %v348_v35 = vsel %vm109_vm2, %v805_v34, 0 }
 0x17f   :  { %v254_v25 = vrot.slane %v239_v20, %v918_v14  ;;  %772 = vmatpush3.bf16.msra.mxu1 %v348_v35 }
 0x180   :  { %773 = vmatprep.subr.bf16.mxu1 %v806_v36 }
 0x181   :  { %v256_v26 = vadd.f32 %v254_v25, %v246_v21  ;;  %v257_v27 = vadd.f32 %v254_v25, %v247_v22  ;;  %v258_v28 = vadd.f32 %v254_v25, %v248_v23  ;;  %v259_v29 = vadd.f32 %v254_v25, %v249_v24 }
 0x183   :  { %v260_v30 = vmax.f32 %v256_v26, 0.0  ;;  %v261_v31 = vmax.f32 %v257_v27, 0.0  ;;  %v262_v32 = vmax.f32 %v258_v28, 0.0  ;;  %v263_v33 = vmax.f32 %v259_v29, 0.0  ;;  %774 = vmatpush3.bf16.msra.mxu1 %v806_v36 }
 0x185   :  { %264 = vst.msk [vmem:[#allocation3 + $0x1] sm:$0xff] %vm89_vm3, %v260_v30  ;;  %265 = vst.msk [vmem:[#allocation3 + $0x9] sm:$0xff] %vm89_vm3, %v261_v31 }
 0x186   :  { %266 = vst.msk [vmem:[#allocation3 + $0x19] sm:$0xff] %vm89_vm3, %v262_v32  ;;  %267 = vst.msk [vmem:[#allocation3 + $0x21] sm:$0xff] %vm89_vm3, %v263_v33 }
 0x18c   :  { %v277_v39 = vld [vmem:[#allocation3 + $0x1] sm:$0xff]  ;;  %v278_v41 = vld [vmem:[#allocation3 + $0x9] sm:$0xff] }
 0x18d   :  { %v279_v37 = vld [vmem:[#allocation3 + $0x19] sm:$0xff]  ;;  %v280_v38 = vld [vmem:[#allocation3 + $0x21] sm:$0xff]  ;;  %v785_v42 = vpack.i.bf16 %v278_v41, %v277_v39  ;;  %v282_v46 = vld [vmem:[#allocation3 + $0xa] sm:$0xff] }
 0x18e   :  { %v790_v40 = vpack.i.bf16 %v280_v38, %v279_v37  ;;  %v283_v43 = vld [vmem:[#allocation3 + $0x1a] sm:$0xff]  ;;  %v284_v44 = vld [vmem:[#allocation3 + $0x22] sm:$0xff] }
 0x18f   :  { %v281_v45 = vld [vmem:[#allocation3 + $0x2] sm:$0xff]  ;;  %786 = vrot.lane.b32.xlu0 %v785_v42, %s812_s13  ;;  %v800_v47 = vpack.i.bf16 %v284_v44, %v283_v43  ;;  %v275_v56 = vld [vmem:[#allocation3 + $0x18] sm:$0xff] }
 0x190   :  { %791 = vrot.lane.b32.xlu1 %v790_v40, %s812_s13  ;;  %v795_v48 = vpack.i.bf16 %v282_v46, %v281_v45  ;;  %v276_v57 = vld [vmem:[#allocation3 + $0x20] sm:$0xff]  ;;  %v274_v2 = vld [vmem:[#allocation3 + $0x8] sm:$0xff] }
 0x191   :  { %v273_v1 = vld [vmem:[#allocation3] sm:$0xff] }
 0x193   :  { %796 = vrot.lane.b32.xlu0 %v795_v48, %s814_s19 }
 0x194   :  { %801 = vrot.lane.b32.xlu1 %v800_v47, %s814_s19 }
 0x201   :  { %v787_v50 = vpop.permute.xlu0 %786 }
 0x202   :  { %v792_v49 = vpop.permute.xlu1 %791  ;;  %v789_v53 = vunpack.i.h.bf16 %v787_v50  ;;  %v788_v54 = vunpack.i.l.bf16 %v787_v50 }
 0x203   :  { %v794_v51 = vunpack.i.h.bf16 %v792_v49  ;;  %v793_v52 = vunpack.i.l.bf16 %v792_v49 }
 0x204   :  { %v317_v5 = vsel %vm89_vm3, %v273_v1, %v788_v54  ;;  %v318_v6 = vsel %vm89_vm3, %v274_v2, %v789_v53  ;;  %v434_v53 = vld [vmem:[%s1007_s5] sm:$0x1] }
 0x205   :  { %v797_v60 = vpop.permute.xlu0 %796  ;;  %v319_v61 = vsel %vm89_vm3, %v275_v56, %v793_v52  ;;  %v320_v62 = vsel %vm89_vm3, %v276_v57, %v794_v51 }
 0x206   :  { %v802_v55 = vpop.permute.xlu1 %801  ;;  %v799_v63 = vunpack.i.h.bf16 %v797_v60  ;;  %v798_v0 = vunpack.i.l.bf16 %v797_v60 }
 0x207   :  { %v804_v58 = vunpack.i.h.bf16 %v802_v55  ;;  %v803_v59 = vunpack.i.l.bf16 %v802_v55  ;;  %v815_v55 = vmov 1983009808  }
 0x208   :  { %v322_v8 = vsel %vm321_vm6, %v317_v5, %v798_v0  ;;  %v323_v9 = vsel %vm321_vm6, %v318_v6, %v799_v63  ;;  %v471_v56 = vunpack.c.l.s4 %v815_v55 }
 0x209   :  { %v324_v3 = vsel %vm321_vm6, %v319_v61, %v803_v59  ;;  %v325_v4 = vsel %vm321_vm6, %v320_v62, %v804_v58  ;;  %v326_v10 = vpack.c.bf16 %v323_v9, %v322_v8  ;;  %v438_v58 = vld [vmem:[%s1008_s6] sm:$0x1] }
 0x20a   :  { %v327_v7 = vpack.c.bf16 %v325_v4, %v324_v3  ;;  %v472_v61 = vunpack.c.0.s8 %v471_v56 }
 0x20b   :  { %775 = vmatprep.mubr.msk.bf16.mxu1 %vm340_vm7, %v326_v10 }
 0x20c   :  { %776 = vmatmul.mubr.msk.bf16.vlgmr.msra.gmra.mxu1 %vm340_vm7, %v327_v7  ;;  %v475_v4 = vsub.s32 %v472_v61, %v912_v12 }
 0x2cc   :  { %v777_v11 = vpop.f32.mrf.mxu1 }
 0x2cd   :  { %v414_v18 = vmul.f32 %v777_v11, %v777_v11  ;;  %v402_v23 = vsel %vm89_vm3, %v777_v11, 0.0 }
 0x2ce   :  { %v384_v13 = vpop.f32.mrf.mxu1 }
 0x2cf   :  { %v412_v16 = vmul.f32 %v384_v13, %v384_v13  ;;  %v399_v19 = vsel %vm89_vm3, %v384_v13, 0.0  ;;  %v419_v29 = vsel %vm89_vm3, %v414_v18, 0.0 }
 0x2d0   :  { %v778_v15 = vpop.f32.mrf.mxu1 }
 0x2d1   :  { %v416_v24 = vsel %vm89_vm3, %v412_v16, 0.0  ;;  %v415_v25 = vmul.f32 %v778_v15, %v778_v15  ;;  %v404_v30 = vsel %vm89_vm3, %v778_v15, 0.0 }
 0x2d2   :  { %v387_v17 = vpop.f32.mrf.mxu1 }
 0x2d3   :  { %v400_v20 = vsel %vm89_vm3, %v387_v17, 0.0  ;;  %v413_v21 = vmul.f32 %v387_v17, %v387_v17  ;;  %v421_v33 = vsel %vm89_vm3, %v415_v25, 0.0 }
 0x2d4   :  { %v401_v22 = vadd.f32 %v400_v20, %v399_v19 }
 0x2d5   :  { %v417_v26 = vsel %vm89_vm3, %v413_v21, 0.0 }
 0x2d6   :  { %v403_v27 = vadd.f32 %v402_v23, %v401_v22  ;;  %v418_v28 = vadd.f32 %v417_v26, %v416_v24 }
 0x2d8   :  { %v405_v31 = vadd.f32 %v404_v30, %v403_v27  ;;  %v420_v32 = vadd.f32 %v419_v29, %v418_v28 }
 0x2da   :  { %v406_v34 = vrot.slane %v405_v31, 4  ;;  %v422_v35 = vadd.f32 %v421_v33, %v420_v32 }
 0x2dc   :  { %v407_v36 = vadd.f32 %v406_v34, %v405_v31  ;;  %v423_v37 = vrot.slane %v422_v35, 4 }
 0x2de   :  { %v408_v38 = vrot.slane %v407_v36, 2  ;;  %v424_v39 = vadd.f32 %v423_v37, %v422_v35 }
 0x2e0   :  { %v409_v40 = vadd.f32 %v408_v38, %v407_v36  ;;  %v425_v41 = vrot.slane %v424_v39, 2 }
 0x2e2   :  { %v410_v42 = vrot.slane %v409_v40, 1  ;;  %v426_v43 = vadd.f32 %v425_v41, %v424_v39 }
 0x2e4   :  { %v411_v44 = vadd.f32 %v410_v42, %v409_v40  ;;  %v427_v45 = vrot.slane %v426_v43, 1 }
 0x2e6   :  { %v428_v46 = vadd.f32 %v427_v45, %v426_v43  ;;  %v429_v47 = vmul.f32 0.03125, %v411_v44 }
 0x2e8   :  { %v430_v48 = vmul.f32 0.03125, %v428_v46  ;;  %v431_v49 = vmul.f32 %v429_v47, %v429_v47 }
 0x2ea   :  { %v432_v50 = vsub.f32 %v430_v48, %v431_v49 }
 0x2ec   :  { %v433_v51 = vmax.f32 %v432_v50, 0.0 }
 0x2ee   :  { %v435_v52 = vadd.f32 1e-05, %v433_v51 }
 0x2f0   :  { %809 = vrsqrt.f32 %v435_v52 }
 0x2fd   :  { %v810_v54 = vpop.eup %809 }
 0x2fe   :  { %v437_v57 = vmul.f32 %v810_v54, %v434_v53 }
 0x300   :  { %v439_v59 = vmul.f32 %v437_v57, %v429_v47  ;;  %v445_v60 = vrot.slane %v437_v57, %v918_v14 }
 0x302   :  { %v440_v62 = vsub.f32 %v438_v58, %v439_v59  ;;  %v447_v63 = vmul.f32 %v445_v60, %v384_v13  ;;  %v448_v0 = vmul.f32 %v445_v60, %v387_v17  ;;  %v449_v1 = vmul.f32 %v777_v11, %v445_v60 }
 0x303   :  { %v450_v2 = vmul.f32 %v778_v15, %v445_v60 }
 0x304   :  { %v455_v3 = vrot.slane %v440_v62, %v918_v14 }
 0x306   :  { %v457_v5 = vadd.f32 %v455_v3, %v447_v63  ;;  %v458_v6 = vadd.f32 %v455_v3, %v448_v0  ;;  %v459_v7 = vadd.f32 %v455_v3, %v449_v1  ;;  %v460_v8 = vadd.f32 %v455_v3, %v450_v2 }
 0x308   :  { %v461_v9 = vmax.f32 %v457_v5, 0.0  ;;  %v462_v10 = vmax.f32 %v458_v6, 0.0  ;;  %v463_v16 = vmax.f32 %v459_v7, 0.0  ;;  %v464_v18 = vmax.f32 %v460_v8, 0.0 }
 0x30a   :  { %v469_v19 = vcombine.high %v461_v9, %v461_v9  ;;  %v476_v20 = vrot.slane %v461_v9, %v475_v4  ;;  %v486_v21 = vcombine.high %v462_v10, %v462_v10  ;;  %v493_v22 = vrot.slane %v462_v10, %v475_v4 }
 0x30b   :  { %v503_v13 = vcombine.high %v463_v16, %v463_v16  ;;  %v510_v17 = vrot.slane %v463_v16, %v475_v4  ;;  %v520_v11 = vcombine.high %v464_v18, %v464_v18  ;;  %v527_v24 = vrot.slane %v464_v18, %v475_v4 }
 0x30c   :  { %v483_v15 = vrot.slane %v469_v19, %v475_v4  ;;  %v484_v23 = vcombine.high %v476_v20, %v476_v20  ;;  %v500_v27 = vrot.slane %v486_v21, %v475_v4  ;;  %v501_v29 = vcombine.high %v493_v22, %v493_v22 }
 0x30d   :  { %v517_v25 = vrot.slane %v503_v13, %v475_v4  ;;  %v518_v12 = vcombine.high %v510_v17, %v510_v17  ;;  %v534_v28 = vrot.slane %v520_v11, %v475_v4  ;;  %v535_v32 = vcombine.high %v527_v24, %v527_v24 }
 0x30e   :  { %v485_v26 = vcombine.high %v483_v15, %v483_v15  ;;  %v736_v31 = vrot.slane %v484_v23, 9  ;;  %v735_v33 = vrot.slane %v476_v20, 9  ;;  %v737_v34 = vrot.slane %v483_v15, 9 }
 0x30f   :  { %v519_v30 = vcombine.high %v517_v25, %v517_v25  ;;  %v743_v36 = vrot.slane %v510_v17, 9  ;;  %v744_v37 = vrot.slane %v518_v12, 9  ;;  %v745_v38 = vrot.slane %v517_v25, 9 }
 0x310   :  { %v738_v35 = vrot.slane %v485_v26, 9  ;;  %v502_v40 = vcombine.high %v500_v27, %v500_v27  ;;  %v536_v41 = vcombine.high %v534_v28, %v534_v28  ;;  %v739_v42 = vrot.slane %v493_v22, 9 }
 0x311   :  { %v746_v39 = vrot.slane %v519_v30, 9  ;;  %v740_v43 = vrot.slane %v501_v29, 9  ;;  %v747_v44 = vrot.slane %v527_v24, 9  ;;  %v602_v45 = vmax.f32 %v484_v23, %v736_v31 }
 0x312   :  { %v748_v46 = vrot.slane %v535_v32, 9  ;;  %v601_v47 = vmax.f32 %v476_v20, %v735_v33  ;;  %v603_v48 = vmax.f32 %v483_v15, %v737_v34  ;;  %v604_v49 = vmax.f32 %v485_v26, %v738_v35 }
 0x313   :  { %v609_v50 = vmax.f32 %v510_v17, %v743_v36  ;;  %v610_v51 = vmax.f32 %v518_v12, %v744_v37  ;;  %v611_v52 = vmax.f32 %v517_v25, %v745_v38  ;;  %v612_v53 = vmax.f32 %v519_v30, %v746_v39 }
 0x314   :  { %v741_v54 = vrot.slane %v500_v27, 9  ;;  %v742_v55 = vrot.slane %v502_v40, 9  ;;  %v749_v56 = vrot.slane %v534_v28, 9  ;;  %v750_v57 = vrot.slane %v536_v41, 9 }
 0x315   :  { %v605_v58 = vmax.f32 %v493_v22, %v739_v42  ;;  %v606_v59 = vmax.f32 %v501_v29, %v740_v43  ;;  %v613_v60 = vmax.f32 %v527_v24, %v747_v44  ;;  %v640_v61 = vrot.slane %v602_v45, %v918_v14 }
 0x316   :  { %v614_v62 = vmax.f32 %v535_v32, %v748_v46  ;;  %v636_v63 = vrot.slane %v601_v47, %v918_v14  ;;  %v644_v0 = vrot.slane %v603_v48, %v918_v14  ;;  %v648_v1 = vrot.slane %v604_v49, %v918_v14 }
 0x317   :  { %v668_v2 = vrot.slane %v609_v50, %v918_v14  ;;  %v672_v3 = vrot.slane %v610_v51, %v918_v14  ;;  %v676_v4 = vrot.slane %v611_v52, %v918_v14  ;;  %v680_v5 = vrot.slane %v612_v53, %v918_v14 }
 0x318   :  { %v607_v6 = vmax.f32 %v500_v27, %v741_v54  ;;  %v615_v7 = vmax.f32 %v534_v28, %v749_v56  ;;  %v608_v8 = vmax.f32 %v502_v40, %v742_v55  ;;  %v616_v9 = vmax.f32 %v536_v41, %v750_v57 }
 0x319   :  { %v698_v10 = vsel %vm697_vm8, %v640_v61, %v636_v63  ;;  %v711_v16 = vsel %vm697_vm8, %v672_v3, %v668_v2  ;;  %v652_v18 = vrot.slane %v605_v58, %v918_v14  ;;  %v684_v19 = vrot.slane %v613_v60, %v918_v14 }
 0x31a   :  { %v700_v20 = vsel %vm699_vm9, %v644_v0, %v698_v10  ;;  %v712_v21 = vsel %vm699_vm9, %v676_v4, %v711_v16  ;;  %v656_v22 = vrot.slane %v606_v59, %v918_v14  ;;  %v688_v13 = vrot.slane %v614_v62, %v918_v14 }
 0x31b   :  { %v702_v17 = vsel %vm701_vm10, %v648_v1, %v700_v20  ;;  %v713_v11 = vsel %vm701_vm10, %v680_v5, %v712_v21  ;;  %v660_v15 = vrot.slane %v607_v6, %v918_v14  ;;  %v692_v23 = vrot.slane %v615_v7, %v918_v14 }
 0x31c   :  { %v704_v24 = vsel %vm703_vm11, %v652_v18, %v702_v17  ;;  %v714_v25 = vsel %vm703_vm11, %v684_v19, %v713_v11  ;;  %v664_v12 = vrot.slane %v608_v8, %v918_v14  ;;  %v696_v26 = vrot.slane %v616_v9, %v918_v14 }
 0x31d   :  { %v706_v27 = vsel %vm705_vm12, %v656_v22, %v704_v24  ;;  %v715_v28 = vsel %vm705_vm12, %v688_v13, %v714_v25 }
 0x31e   :  { %v708_v29 = vsel %vm707_vm13, %v660_v15, %v706_v27  ;;  %v716_v30 = vsel %vm707_vm13, %v692_v23, %v715_v28 }
 0x31f   :  { %v710_v31 = vsel %vm709_vm14, %v664_v12, %v708_v29  ;;  %v717_v32 = vsel %vm709_vm14, %v696_v26, %v716_v30 }
 0x320   :  { %720 = vst.msk [vmem:[%s1009_s7] sm:$0xff] %vm89_vm3, %v710_v31  ;;  %721 = vst.msk [vmem:[%s1009_s7 + $0x8] sm:$0xff] %vm89_vm3, %v717_v32 }

</bundles_post_ra>
